<compile_context>
chip_gen: v7x
topology: tpu7x:2x2x1
jax: 0.10.0
libtpu: 0.0.40
codegen_flags: <defaults>
</compile_context>

<pallas_src>
import math

import jax
import jax.numpy as jnp
from jax.experimental import pallas as pl
from jax.experimental.pallas import tpu as pltpu

_GELU_C = math.sqrt(2.0 / math.pi)


def _gelu_tanh_f32(h):
    # Fused cubic keeps the number of simultaneously-live fp32 (tm, H)
    # temporaries to ~2; tanh goes to the EUP slot (free under the MXU).
    return 0.5 * h * (1.0 + jnp.tanh(_GELU_C * (h * (1.0 + 0.044715 * (h * h)))))


# ---------------------------------------------------------------------------
# Kernel bodies
# ---------------------------------------------------------------------------
def _mlp_kernel_resident(x_ref, wfc_ref, bfc_ref, wproj_ref, bproj_ref, o_ref):
    """Both weight matrices resident in VMEM; x/out streamed in (tm, C) tiles."""
    h = jnp.dot(x_ref[...], wfc_ref[...], preferred_element_type=jnp.float32)
    h = h + bfc_ref[...].astype(jnp.float32)
    g = _gelu_tanh_f32(h)
    y = jnp.dot(g.astype(wproj_ref.dtype), wproj_ref[...],
                preferred_element_type=jnp.float32)
    o_ref[...] = (y + bproj_ref[...].astype(jnp.float32)).astype(o_ref.dtype)


def _mlp_kernel_htiled(x_ref, wfc_ref, bfc_ref, wproj_ref, bproj_ref, o_ref,
                       acc_ref):
    """Hidden dim streamed in th-wide tiles; fp32 (tm, C) accumulator scratch."""
    j = pl.program_id(1)

    @pl.when(j == 0)
    def _init():
        acc_ref[...] = jnp.zeros_like(acc_ref)

    h = jnp.dot(x_ref[...], wfc_ref[...], preferred_element_type=jnp.float32)
    h = h + bfc_ref[...].astype(jnp.float32)
    g = _gelu_tanh_f32(h)  # GELU is elementwise in H -> exact per H-tile.
    acc_ref[...] += jnp.dot(g.astype(wproj_ref.dtype), wproj_ref[...],
                            preferred_element_type=jnp.float32)

    @pl.when(j == pl.num_programs(1) - 1)
    def _finalize():
        o_ref[...] = (acc_ref[...] + bproj_ref[...].astype(jnp.float32)
                      ).astype(o_ref.dtype)


# ---------------------------------------------------------------------------
# Helpers
# ---------------------------------------------------------------------------
def _vmem_capacity_bytes():
    """Per-core VMEM capacity; conservative 64 MiB (v7x per-TC) on failure."""
    try:
        cap = getattr(pltpu.get_tpu_info(), "vmem_capacity_bytes", None)
        if cap:
            return int(cap)
    except Exception:
        pass
    return 64 * 1024 * 1024


def _const_block_spec(block_shape, single_buffer):
    """BlockSpec with a constant index map; single-buffered when supported."""
    index_map = lambda *_: (0,) * len(block_shape)
    if single_buffer:
        try:
            return pl.BlockSpec(block_shape, index_map,
                                pipeline_mode=pl.Buffered(1))
        except (TypeError, AttributeError):
            pass
    return pl.BlockSpec(block_shape, index_map)


def _call_with_fallback(kernel, grid, in_specs_fn, out_spec, scratch_shapes,
                        dim_sem, vmem_limit, cost, out_shape, args):
    """Try single-buffered resident operands; retry double-buffered if rejected."""
    last_err = None
    for single_buffer in (True, False):
        try:
            fn = pl.pallas_call(
                kernel,
                out_shape=out_shape,
                grid_spec=pltpu.PrefetchScalarGridSpec(
                    num_scalar_prefetch=0,
                    grid=grid,
                    in_specs=in_specs_fn(single_buffer),
                    out_specs=out_spec,
                    scratch_shapes=tuple(scratch_shapes)),
                compiler_params=pltpu.CompilerParams(
                    dimension_semantics=dim_sem,
                    vmem_limit_bytes=vmem_limit),
                cost_estimate=cost,
            )
            return fn(*args)
        except Exception as err:  # Buffered(1) unsupported -> retry default.
            last_err = err
    raise last_err


# ---------------------------------------------------------------------------
# Public wrapper
# ---------------------------------------------------------------------------
def mlp_pallas(x, w_fc, b_fc, w_proj, b_proj, *, tm=None, th=None,
               force_h_tiled=False, compute_dtype=None):
    """GPT-2 MLP forward. x: (B, T, C); weights in (in, out) layout."""
    out_dtype = x.dtype
    if compute_dtype is not None:
        # v5e/v6e lever: feed the MXU bf16 instead of the slow fp32 multi-pass
        # path.  Off by default to preserve the module's fp32 semantics.
        x, w_fc, b_fc, w_proj, b_proj = (
            a.astype(compute_dtype) for a in (x, w_fc, b_fc, w_proj, b_proj))

    B, T, C = x.shape
    H = w_fc.shape[1]
    M = B * T

    dbytes = jnp.dtype(x.dtype).itemsize
    wbytes = jnp.dtype(w_fc.dtype).itemsize

    vmem_cap = _vmem_capacity_bytes()
    vmem_budget = int(0.80 * vmem_cap)  # headroom for compiler-internal scratch

    # ---- row tile size ----------------------------------------------------
    if tm is None:
        tm = 512 if vmem_cap >= (96 << 20) else 256   # v5e/v6e vs v7x per-TC
        if M >= 256:
            tm = max(256, (min(tm, M) // 256) * 256)   # MXU / lane aligned
        else:
            tm = max(8, ((min(tm, M) + 7) // 8) * 8)   # small-M: pad to 8 only
    else:
        tm = max(8, ((min(tm, M) + 7) // 8) * 8)

    m_pad = pl.cdiv(M, tm) * tm
    x2 = x.reshape(M, C)
    if m_pad != M:
        x2 = jnp.pad(x2, ((0, m_pad - M), (0, 0)))
    b_fc2 = b_fc.reshape(1, H)
    b_proj2 = b_proj.reshape(1, C)

    def resident_vmem(nbuf_w):
        return (nbuf_w * (C * H + H * C + H + C) * wbytes   # weights/biases
                + 2 * 2 * tm * C * dbytes                   # x + out tiles (2-buf)
                + 3 * tm * H * 4                            # live fp32 GELU temps
                + tm * C * 4                                # fp32 c_proj result
                + (2 << 20))                                # slack

    use_resident = (not force_h_tiled) and resident_vmem(1) <= vmem_budget

    if use_resident:
        grid = (m_pad // tm,)
        vmem_limit = int(min(max(resident_vmem(2), 32 << 20),
                             int(0.9 * vmem_cap)))
        cost = pl.CostEstimate(
            flops=4 * m_pad * C * H,
            transcendentals=m_pad * H,
            bytes_accessed=(2 * m_pad * C * dbytes
                            + (C * H + H * C + H + C) * wbytes))

        def in_specs(single_buffer):
            return [
                pl.BlockSpec((tm, C), lambda i: (i, 0)),          # x: streamed
                _const_block_spec((C, H), single_buffer),         # W_fc resident
                _const_block_spec((1, H), single_buffer),         # b_fc resident
                _const_block_spec((H, C), single_buffer),         # W_proj resident
                _const_block_spec((1, C), single_buffer),         # b_proj resident
            ]

        out2 = _call_with_fallback(
            _mlp_kernel_resident, grid, in_specs,
            pl.BlockSpec((tm, C), lambda i: (i, 0)),
            scratch_shapes=[],
            dim_sem=("parallel",),
            vmem_limit=vmem_limit, cost=cost,
            out_shape=jax.ShapeDtypeStruct((m_pad, C), out_dtype),
            args=(x2, w_fc, b_fc2, w_proj, b_proj2))
    else:
        # ---- H-tiled accumulator fallback ----------------------------------
        def htiled_vmem(th_):
            return (2 * (2 * C * th_ + th_) * wbytes   # W_fc/W_proj/b_fc tiles 2-buf
                    + C * wbytes                        # b_proj
                    + 2 * 2 * tm * C * dbytes           # x + out tiles
                    + tm * C * 4                        # fp32 accumulator
                    + 3 * tm * th_ * 4                  # fp32 GELU temps
                    + (2 << 20))

        if th is None:
            th = 128
            for cand in (2048, 1024, 512, 256, 128):
                if htiled_vmem(cand) <= vmem_budget:
                    th = cand
                    break
        th = min(th, H)
        th = max(128, (th // 128) * 128) if H >= 128 else H

        h_pad = pl.cdiv(H, th) * th
        w_fc_p, b_fc_p, w_proj_p = w_fc, b_fc2, w_proj
        if h_pad != H:
            # Zero-padded hidden columns produce h=0 -> gelu(0)=0 -> contribute 0.
            w_fc_p = jnp.pad(w_fc, ((0, 0), (0, h_pad - H)))
            b_fc_p = jnp.pad(b_fc2, ((0, 0), (0, h_pad - H)))
            w_proj_p = jnp.pad(w_proj, ((0, h_pad - H), (0, 0)))

        grid = (m_pad // tm, h_pad // th)
        vmem_limit = int(min(max(htiled_vmem(th) + (4 << 20), 32 << 20),
                             int(0.9 * vmem_cap)))
        cost = pl.CostEstimate(
            flops=4 * m_pad * C * h_pad,
            transcendentals=m_pad * h_pad,
            bytes_accessed=(2 * m_pad * C * dbytes
                            + (m_pad // tm) * 2 * C * h_pad * wbytes
                            + (h_pad + C) * wbytes))

        def in_specs(single_buffer):
            return [
                pl.BlockSpec((tm, C), lambda i, j: (i, 0)),    # x tile
                pl.BlockSpec((C, th), lambda i, j: (0, j)),    # W_fc H-slice
                pl.BlockSpec((1, th), lambda i, j: (0, j)),    # b_fc H-slice
                pl.BlockSpec((th, C), lambda i, j: (j, 0)),    # W_proj H-slice
                _const_block_spec((1, C), single_buffer),      # b_proj resident
            ]

        out2 = _call_with_fallback(
            _mlp_kernel_htiled, grid, in_specs,
            pl.BlockSpec((tm, C), lambda i, j: (i, 0)),
            scratch_shapes=[pltpu.VMEM((tm, C), jnp.float32)],
            dim_sem=("parallel", "arbitrary"),
            vmem_limit=vmem_limit, cost=cost,
            out_shape=jax.ShapeDtypeStruct((m_pad, C), out_dtype),
            args=(x2, w_fc_p, b_fc_p, w_proj_p, b_proj2))

    if m_pad != M:
        out2 = out2[:M]
    return out2.reshape(B, T, C)


def mlp_reference(x, w_fc, b_fc, w_proj, b_proj):
    h = jnp.einsum("btc,ch->bth", x, w_fc) + b_fc
    g = 0.5 * h * (1.0 + jnp.tanh(_GELU_C * (h + 0.044715 * h ** 3)))
    return jnp.einsum("bth,hc->btc", g, w_proj) + b_proj


if __name__ == "__main__":
    # Small GPT-2-style config: batch=2, seq=8, n_embd=64 -> hidden=256.
    B, T, C = 2, 8, 64
    H = 4 * C

    key = jax.random.PRNGKey(0)
    k_x, k_wfc, k_bfc, k_wproj, k_bproj = jax.random.split(key, 5)

    x = jax.random.normal(k_x, (B, T, C), dtype=jnp.float32)
    # Params stored as (in, out) = transpose of torch nn.Linear's (out, in).
    w_fc = jax.random.normal(k_wfc, (C, H), dtype=jnp.float32) * 0.02
    b_fc = jax.random.normal(k_bfc, (H,), dtype=jnp.float32) * 0.02
    w_proj = jax.random.normal(k_wproj, (H, C), dtype=jnp.float32) * 0.02
    b_proj = jax.random.normal(k_bproj, (C,), dtype=jnp.float32) * 0.02

    ref = mlp_reference(x, w_fc, b_fc, w_proj, b_proj)

    # 1) Resident-weights path (auto tile selection, single grid step here).
    out = jax.block_until_ready(mlp_pallas(x, w_fc, b_fc, w_proj, b_proj))
    assert out.shape == (B, T, C)
    assert jnp.allclose(out, ref, atol=1e-5, rtol=1e-5), "resident path mismatch"

    # 2) Multi-row-tile pipeline path (grid of 2 row tiles).
    out_tiled = jax.block_until_ready(
        mlp_pallas(x, w_fc, b_fc, w_proj, b_proj, tm=8))
    assert jnp.allclose(out_tiled, ref, atol=1e-5, rtol=1e-5), "tiled path mismatch"

    # 3) H-tiled accumulator fallback (forced; 2 hidden tiles of 128).
    out_h = jax.block_until_ready(
        mlp_pallas(x, w_fc, b_fc, w_proj, b_proj, force_h_tiled=True, th=128))
    assert jnp.allclose(out_h, ref, atol=1e-5, rtol=1e-5), "h-tiled path mismatch"

    print("KERNEL_OK")
</pallas_src>

<mosaic_0001>
module attributes {stable_mosaic.version = 11 : i64} {
  func.func @_mlp_kernel_resident(%arg0: i32, %arg1: memref<16x64xf32, #tpu.memory_space<vmem>>, %arg2: memref<64x256xf32, #tpu.memory_space<vmem>>, %arg3: memref<1x256xf32, #tpu.memory_space<vmem>>, %arg4: memref<256x64xf32, #tpu.memory_space<vmem>>, %arg5: memref<1x64xf32, #tpu.memory_space<vmem>>, %arg6: memref<16x64xf32, #tpu.memory_space<vmem>>) attributes {dimension_semantics = [#tpu.dimension_semantics<parallel>], iteration_bounds = array<i64: 1>, scalar_prefetch = 0 : i64, scratch_operands = 0 : i64, tpu.core_type = #tpu.core_type<tc>, window_params = [{transform_indices = @transform_0, window_bounds = array<i64: 16, 64>}, {pipeline_mode = #tpu.pipeline_mode<synchronous>, transform_indices = @transform_1, window_bounds = array<i64: 64, 256>}, {pipeline_mode = #tpu.pipeline_mode<synchronous>, transform_indices = @transform_2, window_bounds = array<i64: 1, 256>}, {pipeline_mode = #tpu.pipeline_mode<synchronous>, transform_indices = @transform_3, window_bounds = array<i64: 256, 64>}, {pipeline_mode = #tpu.pipeline_mode<synchronous>, transform_indices = @transform_4, window_bounds = array<i64: 1, 64>}, {transform_indices = @transform_5, window_bounds = array<i64: 16, 64>}]} {
    %c0 = arith.constant 0 : index
    %c0_0 = arith.constant 0 : index
    %0 = vector.load %arg1[%c0, %c0_0] : memref<16x64xf32, #tpu.memory_space<vmem>>, vector<16x64xf32>
    %c0_1 = arith.constant 0 : index
    %c0_2 = arith.constant 0 : index
    %1 = vector.load %arg2[%c0_1, %c0_2] : memref<64x256xf32, #tpu.memory_space<vmem>>, vector<64x256xf32>
    %cst = arith.constant dense<0.000000e+00> : vector<16x256xf32>
    %2 = tpu.matmul %0, %1, %cst {dimension_numbers = #tpu.dot_dimension_numbers<[1], [0], [0], [1], [0, 0, 1, 1], [], []>} : vector<16x64xf32>, vector<64x256xf32>, vector<16x256xf32> -> vector<16x256xf32>
    %c0_3 = arith.constant 0 : index
    %c0_4 = arith.constant 0 : index
    %3 = vector.load %arg3[%c0_3, %c0_4] : memref<1x256xf32, #tpu.memory_space<vmem>>, vector<1x256xf32>
    %4 = vector.broadcast %3 : vector<1x256xf32> to vector<16x256xf32>
    %5 = arith.addf %2, %4 : vector<16x256xf32>
    %cst_5 = arith.constant 5.000000e-01 : f32
    %6 = vector.broadcast %cst_5 : f32 to vector<16x256xf32>
    %7 = arith.mulf %6, %5 : vector<16x256xf32>
    %8 = arith.mulf %5, %5 : vector<16x256xf32>
    %cst_6 = arith.constant 4.471500e-02 : f32
    %9 = vector.broadcast %cst_6 : f32 to vector<16x256xf32>
    %10 = arith.mulf %9, %8 : vector<16x256xf32>
    %cst_7 = arith.constant 1.000000e+00 : f32
    %11 = vector.broadcast %cst_7 : f32 to vector<16x256xf32>
    %12 = arith.addf %11, %10 : vector<16x256xf32>
    %13 = arith.mulf %5, %12 : vector<16x256xf32>
    %cst_8 = arith.constant 0.797884583 : f32
    %14 = vector.broadcast %cst_8 : f32 to vector<16x256xf32>
    %15 = arith.mulf %14, %13 : vector<16x256xf32>
    %16 = math.tanh %15 : vector<16x256xf32>
    %cst_9 = arith.constant 1.000000e+00 : f32
    %17 = vector.broadcast %cst_9 : f32 to vector<16x256xf32>
    %18 = arith.addf %17, %16 : vector<16x256xf32>
    %19 = arith.mulf %7, %18 : vector<16x256xf32>
    %c0_10 = arith.constant 0 : index
    %c0_11 = arith.constant 0 : index
    %20 = vector.load %arg4[%c0_10, %c0_11] : memref<256x64xf32, #tpu.memory_space<vmem>>, vector<256x64xf32>
    %cst_12 = arith.constant dense<0.000000e+00> : vector<16x64xf32>
    %21 = tpu.matmul %19, %20, %cst_12 {dimension_numbers = #tpu.dot_dimension_numbers<[1], [0], [0], [1], [0, 0, 1, 1], [], []>} : vector<16x256xf32>, vector<256x64xf32>, vector<16x64xf32> -> vector<16x64xf32>
    %c0_13 = arith.constant 0 : index
    %c0_14 = arith.constant 0 : index
    %22 = vector.load %arg5[%c0_13, %c0_14] : memref<1x64xf32, #tpu.memory_space<vmem>>, vector<1x64xf32>
    %23 = vector.broadcast %22 : vector<1x64xf32> to vector<16x64xf32>
    %24 = arith.addf %21, %23 : vector<16x64xf32>
    %c0_15 = arith.constant 0 : index
    %c0_16 = arith.constant 0 : index
    %25 = vector.load %arg6[%c0_15, %c0_16] : memref<16x64xf32, #tpu.memory_space<vmem>>, vector<16x64xf32>
    tpu.vector_store %arg6[%c0_15, %c0_16], %24 {strides = array<i32>} : memref<16x64xf32, #tpu.memory_space<vmem>>, vector<16x64xf32>,
    return
  }
  func.func @transform_0(%arg0: i32) -> (i32, i32) {
    %c0_i32 = arith.constant 0 : i32
    %c0_i32_0 = arith.constant 0 : i32
    return %arg0, %c0_i32 : i32, i32
  }
  func.func @transform_1(%arg0: i32) -> (i32, i32) {
    %c0_i32 = arith.constant 0 : i32
    %c0_i32_0 = arith.constant 0 : i32
    %c0_i32_1 = arith.constant 0 : i32
    return %c0_i32, %c0_i32_0 : i32, i32
  }
  func.func @transform_2(%arg0: i32) -> (i32, i32) {
    %c0_i32 = arith.constant 0 : i32
    %c0_i32_0 = arith.constant 0 : i32
    %c0_i32_1 = arith.constant 0 : i32
    return %c0_i32, %c0_i32_0 : i32, i32
  }
  func.func @transform_3(%arg0: i32) -> (i32, i32) {
    %c0_i32 = arith.constant 0 : i32
    %c0_i32_0 = arith.constant 0 : i32
    %c0_i32_1 = arith.constant 0 : i32
    return %c0_i32, %c0_i32_0 : i32, i32
  }
  func.func @transform_4(%arg0: i32) -> (i32, i32) {
    %c0_i32 = arith.constant 0 : i32
    %c0_i32_0 = arith.constant 0 : i32
    %c0_i32_1 = arith.constant 0 : i32
    return %c0_i32, %c0_i32_0 : i32, i32
  }
  func.func @transform_5(%arg0: i32) -> (i32, i32) {
    %c0_i32 = arith.constant 0 : i32
    %c0_i32_0 = arith.constant 0 : i32
    return %arg0, %c0_i32 : i32, i32
  }
}

module attributes {stable_mosaic.version = 11 : i64} {
  func.func @_mlp_kernel_resident(%arg0: i32, %arg1: memref<16x64xf32, #tpu.memory_space<vmem>>, %arg2: memref<64x256xf32, #tpu.memory_space<vmem>>, %arg3: memref<1x256xf32, #tpu.memory_space<vmem>>, %arg4: memref<256x64xf32, #tpu.memory_space<vmem>>, %arg5: memref<1x64xf32, #tpu.memory_space<vmem>>, %arg6: memref<16x64xf32, #tpu.memory_space<vmem>>) attributes {dimension_semantics = [#tpu.dimension_semantics<parallel>], iteration_bounds = array<i64: 1>, scalar_prefetch = 0 : i64, scratch_operands = 0 : i64, tpu.core_type = #tpu.core_type<tc>, window_params = [{transform_indices = @transform_0, window_bounds = array<i64: 16, 64>}, {pipeline_mode = #tpu.pipeline_mode<synchronous>, transform_indices = @transform_1, window_bounds = array<i64: 64, 256>}, {pipeline_mode = #tpu.pipeline_mode<synchronous>, transform_indices = @transform_2, window_bounds = array<i64: 1, 256>}, {pipeline_mode = #tpu.pipeline_mode<synchronous>, transform_indices = @transform_3, window_bounds = array<i64: 256, 64>}, {pipeline_mode = #tpu.pipeline_mode<synchronous>, transform_indices = @transform_4, window_bounds = array<i64: 1, 64>}, {transform_indices = @transform_5, window_bounds = array<i64: 16, 64>}]} {
    %c0 = arith.constant 0 : index
    %c0_0 = arith.constant 0 : index
    %0 = vector.load %arg1[%c0, %c0_0] : memref<16x64xf32, #tpu.memory_space<vmem>>, vector<16x64xf32>
    %c0_1 = arith.constant 0 : index
    %c0_2 = arith.constant 0 : index
    %1 = vector.load %arg2[%c0_1, %c0_2] : memref<64x256xf32, #tpu.memory_space<vmem>>, vector<64x256xf32>
    %cst = arith.constant dense<0.000000e+00> : vector<16x256xf32>
    %2 = tpu.matmul %0, %1, %cst {dimension_numbers = #tpu.dot_dimension_numbers<[1], [0], [0], [1], [0, 0, 1, 1], [], []>} : vector<16x64xf32>, vector<64x256xf32>, vector<16x256xf32> -> vector<16x256xf32>
    %c0_3 = arith.constant 0 : index
    %c0_4 = arith.constant 0 : index
    %3 = vector.load %arg3[%c0_3, %c0_4] : memref<1x256xf32, #tpu.memory_space<vmem>>, vector<1x256xf32>
    %4 = vector.broadcast %3 : vector<1x256xf32> to vector<16x256xf32>
    %5 = arith.addf %2, %4 : vector<16x256xf32>
    %cst_5 = arith.constant 5.000000e-01 : f32
    %6 = vector.broadcast %cst_5 : f32 to vector<16x256xf32>
    %7 = arith.mulf %6, %5 : vector<16x256xf32>
    %8 = arith.mulf %5, %5 : vector<16x256xf32>
    %cst_6 = arith.constant 4.471500e-02 : f32
    %9 = vector.broadcast %cst_6 : f32 to vector<16x256xf32>
    %10 = arith.mulf %9, %8 : vector<16x256xf32>
    %cst_7 = arith.constant 1.000000e+00 : f32
    %11 = vector.broadcast %cst_7 : f32 to vector<16x256xf32>
    %12 = arith.addf %11, %10 : vector<16x256xf32>
    %13 = arith.mulf %5, %12 : vector<16x256xf32>
    %cst_8 = arith.constant 0.797884583 : f32
    %14 = vector.broadcast %cst_8 : f32 to vector<16x256xf32>
    %15 = arith.mulf %14, %13 : vector<16x256xf32>
    %16 = math.tanh %15 : vector<16x256xf32>
    %cst_9 = arith.constant 1.000000e+00 : f32
    %17 = vector.broadcast %cst_9 : f32 to vector<16x256xf32>
    %18 = arith.addf %17, %16 : vector<16x256xf32>
    %19 = arith.mulf %7, %18 : vector<16x256xf32>
    %c0_10 = arith.constant 0 : index
    %c0_11 = arith.constant 0 : index
    %20 = vector.load %arg4[%c0_10, %c0_11] : memref<256x64xf32, #tpu.memory_space<vmem>>, vector<256x64xf32>
    %cst_12 = arith.constant dense<0.000000e+00> : vector<16x64xf32>
    %21 = tpu.matmul %19, %20, %cst_12 {dimension_numbers = #tpu.dot_dimension_numbers<[1], [0], [0], [1], [0, 0, 1, 1], [], []>} : vector<16x256xf32>, vector<256x64xf32>, vector<16x64xf32> -> vector<16x64xf32>
    %c0_13 = arith.constant 0 : index
    %c0_14 = arith.constant 0 : index
    %22 = vector.load %arg5[%c0_13, %c0_14] : memref<1x64xf32, #tpu.memory_space<vmem>>, vector<1x64xf32>
    %23 = vector.broadcast %22 : vector<1x64xf32> to vector<16x64xf32>
    %24 = arith.addf %21, %23 : vector<16x64xf32>
    %c0_15 = arith.constant 0 : index
    %c0_16 = arith.constant 0 : index
    %25 = vector.load %arg6[%c0_15, %c0_16] : memref<16x64xf32, #tpu.memory_space<vmem>>, vector<16x64xf32>
    tpu.vector_store %arg6[%c0_15, %c0_16], %24 {strides = array<i32>} : memref<16x64xf32, #tpu.memory_space<vmem>>, vector<16x64xf32>,
    return
  }
  func.func @transform_0(%arg0: i32) -> (i32, i32) {
    %c0_i32 = arith.constant 0 : i32
    %c0_i32_0 = arith.constant 0 : i32
    return %arg0, %c0_i32 : i32, i32
  }
  func.func @transform_1(%arg0: i32) -> (i32, i32) {
    %c0_i32 = arith.constant 0 : i32
    %c0_i32_0 = arith.constant 0 : i32
    %c0_i32_1 = arith.constant 0 : i32
    return %c0_i32, %c0_i32_0 : i32, i32
  }
  func.func @transform_2(%arg0: i32) -> (i32, i32) {
    %c0_i32 = arith.constant 0 : i32
    %c0_i32_0 = arith.constant 0 : i32
    %c0_i32_1 = arith.constant 0 : i32
    return %c0_i32, %c0_i32_0 : i32, i32
  }
  func.func @transform_3(%arg0: i32) -> (i32, i32) {
    %c0_i32 = arith.constant 0 : i32
    %c0_i32_0 = arith.constant 0 : i32
    %c0_i32_1 = arith.constant 0 : i32
    return %c0_i32, %c0_i32_0 : i32, i32
  }
  func.func @transform_4(%arg0: i32) -> (i32, i32) {
    %c0_i32 = arith.constant 0 : i32
    %c0_i32_0 = arith.constant 0 : i32
    %c0_i32_1 = arith.constant 0 : i32
    return %c0_i32, %c0_i32_0 : i32, i32
  }
  func.func @transform_5(%arg0: i32) -> (i32, i32) {
    %c0_i32 = arith.constant 0 : i32
    %c0_i32_0 = arith.constant 0 : i32
    return %arg0, %c0_i32 : i32, i32
  }
}

</mosaic_0001>

<bundles_post_ra>
// kernel: tpu_custom_call.1
= control target key start
LH: loop header
LB: loop body
LE: loop exit
PB: predicated region body
PF: predicated region fallthrough
CT: control target
= control target key end

     0   :  { %v428_v7 = vmov 0.0   ;;  %s634_s0 = inlined_call_operand.vmem [shape: f32[16,64], index: 0, kind: input, shape index: {}]   ;;  %s635_s1 = inlined_call_operand.vmem [shape: f32[64,256], index: 1, kind: input, shape index: {}]   ;;  %s636_s2 = inlined_call_operand.vmem [shape: f32[1,256], index: 2, kind: input, shape index: {}]   ;;  %s637_s3 = inlined_call_operand.vmem [shape: f32[256,64], index: 3, kind: input, shape index: {}]   ;;  %s638_s4 = inlined_call_operand.vmem [shape: f32[1,64], index: 4, kind: input, shape index: {}]   ;;  %s639_s5 = inlined_call_operand.hbm [shape: f32[16,64], index: 5, kind: output, shape index: {}]  }
   0x1   :  { %v24_v0 = vld [vmem:[%s635_s1 + $0x8] sm:$0xff]  ;;  %v26_v1 = vld [vmem:[%s635_s1 + $0x18] sm:$0xff]  ;;  %v23_v2 = vld [vmem:[%s635_s1] sm:$0xff]  ;;  %122 = vmatprep.mubr.f32.mxu0 %v428_v7 }
   0x2   :  { %v344_v3 = vpack.c.bf16 %v26_v1, %v24_v0  ;;  %v25_v4 = vld [vmem:[%s635_s1 + $0x10] sm:$0xff]  ;;  %v28_v5 = vld [vmem:[%s635_s1 + $0x28] sm:$0xff]  ;;  %v30_v6 = vld [vmem:[%s635_s1 + $0x38] sm:$0xff] }
   0x3   :  { %v346_v8 = vpack.c.bf16 %v25_v4, %v23_v2  ;;  %v348_v9 = vpack.c.bf16 %v30_v6, %v28_v5  ;;  %v27_v10 = vld [vmem:[%s635_s1 + $0x20] sm:$0xff]  ;;  %v29_v11 = vld [vmem:[%s635_s1 + $0x30] sm:$0xff]  ;;  %v32_v12 = vld [vmem:[%s635_s1 + $0x48] sm:$0xff] }
   0x4   :  { %345 = vmatprep.subr.bf16.mxu0 %v344_v3  ;;  %v34_v13 = vld [vmem:[%s635_s1 + $0x58] sm:$0xff]  ;;  %v350_v14 = vpack.c.bf16 %v29_v11, %v27_v10  ;;  %v31_v15 = vld [vmem:[%s635_s1 + $0x40] sm:$0xff]  ;;  %v33_v17 = vld [vmem:[%s635_s1 + $0x50] sm:$0xff] }
   0x5   :  { %347 = vmatpush1.bf16.msra.mxu0 %v346_v8  ;;  %v352_v16 = vpack.c.bf16 %v34_v13, %v32_v12  ;;  %v36_v18 = vld [vmem:[%s635_s1 + $0x68] sm:$0xff]  ;;  %v38_v19 = vld [vmem:[%s635_s1 + $0x78] sm:$0xff]  ;;  %v187_v20 = vld [vmem:[%s637_s3 + $0x80] sm:$0xff] }
   0x6   :  { %349 = vmatprep.subr.bf16.mxu0 %v348_v9  ;;  %v188_v21 = vld [vmem:[%s637_s3 + $0x88] sm:$0xff]  ;;  %v171_v22 = vld [vmem:[%s637_s3] sm:$0xff] }
   0x7   :  { %v360_v23 = vpack.c.bf16 %v188_v21, %v187_v20  ;;  %v172_v24 = vld [vmem:[%s637_s3 + $0x8] sm:$0xff] }
   0x8   :  { %10 = vsyncpa [#allocation3], 0  ;;  %v354_v25 = vpack.c.bf16 %v33_v17, %v31_v15  ;;  %v362_v26 = vpack.c.bf16 %v172_v24, %v171_v22  ;;  %v356_v27 = vpack.c.bf16 %v38_v19, %v36_v18  ;;  %v35_v28 = vld [vmem:[%s635_s1 + $0x60] sm:$0xff]  ;;  %v37_v29 = vld [vmem:[%s635_s1 + $0x70] sm:$0xff]  ;;  %vm51_vm0 = vcmask 523264   ;;  %s429_s15 = smov [#allocation2]  }
   0x9   :  { %351 = vmatpush1.bf16.msra.mxu0 %v350_v14  ;;  %361 = vmatprep.subr.bf16.mxu1 %v360_v23  ;;  %v358_v30 = vpack.c.bf16 %v37_v29, %v35_v28  ;;  %v21_v31 = vld [vmem:[%s634_s0] sm:$0xff]  ;;  %v22_v32 = vld [vmem:[%s634_s0 + $0x8] sm:$0xff]  ;;  %v189_v33 = vld [vmem:[%s637_s3 + $0x90] sm:$0xff]  ;;  %v41_v11 = vlaneseq  ;;  %s292_s16 = sshll.u32 %s429_s15, 4  ;;  %s293_s16 = int_to_ptr.vmem [resolvable:$true] %s292_s16 }
   0xa   :  { %353 = vmatprep.subr.bf16.mxu0 %v352_v16  ;;  %363 = vmatpush3.bf16.msra.mxu1 %v362_v26  ;;  %v190_v34 = vld [vmem:[%s637_s3 + $0x98] sm:$0xff]  ;;  %v173_v36 = vld [vmem:[%s637_s3 + $0x10] sm:$0xff]  ;;  %v191_v39 = vld [vmem:[%s637_s3 + $0xa0] sm:$0xff]  ;;  %s404_s17 = scalar_lea.vmem %s293_s16, 256  ;;  %p409_p1 = scmp.lt.s32.totalorder %s293_s16, %s293_s16 }
   0xb   :  { %v364_v35 = vpack.c.bf16 %v190_v34, %v189_v33  ;;  %v174_v37 = vld [vmem:[%s637_s3 + $0x18] sm:$0xff]  ;;  %v192_v40 = vld [vmem:[%s637_s3 + $0xa8] sm:$0xff]  ;;  %v175_v42 = vld [vmem:[%s637_s3 + $0x20] sm:$0xff]  ;;  %v42_v12 = vshrl.u32 %v41_v11, 7  ;;  %p405_p0 = scmp.ne.s32.totalorder %s293_s16, %s404_s17  ;;  %p410_p2 = scmp.lt.s32.totalorder %s404_s17, %s404_s17 }
   0xc   :  { %v366_v38 = vpack.c.bf16 %v174_v37, %v173_v36  ;;  %v368_v41 = vpack.c.bf16 %v192_v40, %v191_v39  ;;  %v176_v43 = vld [vmem:[%s637_s3 + $0x28] sm:$0xff]  ;;  %v193_v45 = vld [vmem:[%s637_s3 + $0xb0] sm:$0xff]  ;;  %v194_v46 = vld [vmem:[%s637_s3 + $0xb8] sm:$0xff] }
   0xd   :  { %355 = vmatpush1.bf16.msra.mxu0 %v354_v25  ;;  %365 = vmatprep.subr.bf16.mxu1 %v364_v35  ;;  %v370_v44 = vpack.c.bf16 %v176_v43, %v175_v42  ;;  %v372_v47 = vpack.c.bf16 %v194_v46, %v193_v45  ;;  %v177_v48 = vld [vmem:[%s637_s3 + $0x30] sm:$0xff]  ;;  %v178_v49 = vld [vmem:[%s637_s3 + $0x38] sm:$0xff]  ;;  %v195_v51 = vld [vmem:[%s637_s3 + $0xc0] sm:$0xff]  ;;  %v43_v13 = vsub.s32 0, %v42_v12  ;;  %v47_v15 = vsub.s32 1, %v42_v12  ;;  %p411_p3 = por %p410_p2, %p409_p1 }
   0xe   :  { %357 = vmatprep.subr.bf16.mxu0 %v356_v27  ;;  %367 = vmatpush3.bf16.msra.mxu1 %v366_v38  ;;  %v374_v50 = vpack.c.bf16 %v178_v49, %v177_v48  ;;  %v196_v52 = vld [vmem:[%s637_s3 + $0xc8] sm:$0xff]  ;;  %v179_v54 = vld [vmem:[%s637_s3 + $0x40] sm:$0xff]  ;;  %v197_v57 = vld [vmem:[%s637_s3 + $0xd0] sm:$0xff] }
   0xf   :  { %369 = vmatprep.subr.bf16.mxu1 %v368_v41  ;;  %v376_v53 = vpack.c.bf16 %v196_v52, %v195_v51  ;;  %v180_v55 = vld [vmem:[%s637_s3 + $0x48] sm:$0xff]  ;;  %v198_v58 = vld [vmem:[%s637_s3 + $0xd8] sm:$0xff]  ;;  %v181_v60 = vld [vmem:[%s637_s3 + $0x50] sm:$0xff]  ;;  %p412_p4 = pnand %p411_p3, %p405_p0 }
  0x10   :  { %v378_v56 = vpack.c.bf16 %v180_v55, %v179_v54  ;;  %v380_v59 = vpack.c.bf16 %v198_v58, %v197_v57  ;;  %v182_v61 = vld [vmem:[%s637_s3 + $0x58] sm:$0xff]  ;;  %v199_v63 = vld [vmem:[%s637_s3 + $0xe0] sm:$0xff]  ;;  %v200_v0 = vld [vmem:[%s637_s3 + $0xe8] sm:$0xff] }
  0x11   :  { %359 = vmatpush1.bf16.msra.mxu0 %v358_v30  ;;  %v382_v62 = vpack.c.bf16 %v182_v61, %v181_v60  ;;  %v183_v1 = vld [vmem:[%s637_s3 + $0x60] sm:$0xff]  ;;  %v384_v2 = vpack.c.bf16 %v200_v0, %v199_v63  ;;  %v184_v3 = vld [vmem:[%s637_s3 + $0x68] sm:$0xff]  ;;  %v201_v4 = vld [vmem:[%s637_s3 + $0xf0] sm:$0xff] }
  0x12   :  { %371 = vmatpush3.bf16.msra.mxu1 %v370_v44  ;;  %v202_v5 = vld [vmem:[%s637_s3 + $0xf8] sm:$0xff]  ;;  %v386_v6 = vpack.c.bf16 %v184_v3, %v183_v1  ;;  %v185_v8 = vld [vmem:[%s637_s3 + $0x70] sm:$0xff]  ;;  %v39_v14 = vld [vmem:[%s636_s2] sm:$0x3] }
  0x13   :  { %373 = vmatprep.subr.bf16.mxu1 %v372_v47  ;;  %v186_v9 = vld [vmem:[%s637_s3 + $0x78] sm:$0xff]  ;;  %v44_v16 = vrot.slane %v39_v14, %v43_v13  ;;  %v48_v17 = vrot.slane %v39_v14, %v47_v15  ;;  %v305_v63 = vld [vmem:[%s638_s4] ss:$0 sm:$0xff] }
  0x14   :  { %303 = vmatmul.mubr.msk.f32.vlgmr.msra.gmra.mrb[0].mxu0 %vm51_vm0, %v21_v31  ;;  %v390_v10 = vpack.c.bf16 %v186_v9, %v185_v8 }
  0x15   :  { %128 = vmatprep.mubr.f32.mxu0 %v428_v7  ;;  %v388_v7 = vpack.c.bf16 %v202_v5, %v201_v4 }
  0x16   :  { %375 = vmatpush3.bf16.msra.mxu1 %v374_v50 }
  0x17   :  { %377 = vmatprep.subr.bf16.mxu1 %v376_v53 }
  0x18   :  { %304 = vmatmul.mubr.msk.f32.gmra.mrb[2].mxu0 %vm51_vm0, %v22_v32 }
  0x1a   :  { %379 = vmatpush3.bf16.msra.mxu1 %v378_v56 }
  0x1b   :  { %381 = vmatprep.subr.bf16.mxu1 %v380_v59 }
  0x1e   :  { %383 = vmatpush3.bf16.msra.mxu1 %v382_v62 }
  0x1f   :  { %385 = vmatprep.subr.bf16.mxu1 %v384_v2 }
  0x22   :  { %387 = vmatpush3.bf16.msra.mxu1 %v386_v6 }
  0x23   :  { %389 = vmatprep.subr.bf16.mxu1 %v388_v7 }
  0x26   :  { %391 = vmatpush3.bf16.msra.mxu1 %v390_v10 }
  0xe7   :  { %v124_v18 = vpop.f32.mrb[0].mxu0 }
  0xe8   :  { %v125_v19 = vadd.f32 %v124_v18, %v44_v16  ;;  %v126_v20 = vpop.f32.mrb[1].mxu0 }
  0xe9   :  { %v127_v21 = vadd.f32 %v126_v20, %v48_v17 }
  0xea   :  { %v139_v22 = vmul.f32 %v125_v19, %v125_v19  ;;  %v135_v51 = vmul.f32 0.5, %v125_v19 }
  0xeb   :  { %v140_v23 = vmul.f32 %v127_v21, %v127_v21  ;;  %v130_v24 = vpop.f32.mrb[2].mxu0  ;;  %v136_v49 = vmul.f32 0.5, %v127_v21 }
  0xec   :  { %v143_v25 = vmul.f32 0.044715, %v139_v22  ;;  %v131_v26 = vadd.f32 %v130_v24, %v44_v16  ;;  %v132_v27 = vpop.f32.mrb[3].mxu0 }
  0xed   :  { %v144_v28 = vmul.f32 0.044715, %v140_v23  ;;  %v133_v29 = vadd.f32 %v132_v27, %v48_v17 }
  0xee   :  { %v147_v30 = vadd.f32 1.0, %v143_v25  ;;  %v141_v31 = vmul.f32 %v131_v26, %v131_v26  ;;  %v137_v59 = vmul.f32 0.5, %v131_v26 }
  0xef   :  { %v148_v32 = vadd.f32 1.0, %v144_v28  ;;  %v142_v33 = vmul.f32 %v133_v29, %v133_v29  ;;  %v138_v57 = vmul.f32 0.5, %v133_v29 }
  0xf0   :  { %v151_v34 = vmul.f32 %v147_v30, %v125_v19  ;;  %v145_v35 = vmul.f32 0.044715, %v141_v31 }
  0xf1   :  { %v152_v36 = vmul.f32 %v148_v32, %v127_v21  ;;  %v146_v37 = vmul.f32 0.044715, %v142_v33 }
  0xf2   :  { %v155_v38 = vmul.f32 0.7978846, %v151_v34  ;;  %v149_v39 = vadd.f32 1.0, %v145_v35 }
  0xf3   :  { %v150_v40 = vadd.f32 1.0, %v146_v37  ;;  %v156_v41 = vmul.f32 0.7978846, %v152_v36 }
  0xf4   :  { %396 = vtanh.f32 %v155_v38  ;;  %v153_v42 = vmul.f32 %v149_v39, %v131_v26 }
  0xf5   :  { %v154_v43 = vmul.f32 %v150_v40, %v133_v29  ;;  %398 = vtanh.f32 %v156_v41 }
  0xf6   :  { %v157_v44 = vmul.f32 0.7978846, %v153_v42 }
  0xf7   :  { %v158_v45 = vmul.f32 0.7978846, %v154_v43 }
  0xf8   :  { %400 = vtanh.f32 %v157_v44 }
  0xf9   :  { %402 = vtanh.f32 %v158_v45 }
  0xfe   :  { %v397_v46 = vpop.eup %396 }
  0xff   :  { %v399_v47 = vpop.eup %398  ;;  %v163_v48 = vadd.f32 1.0, %v397_v46 }
 0x100   :  { %v164_v50 = vadd.f32 1.0, %v399_v47 }
 0x101   :  { %v167_v55 = vmul.f32 %v163_v48, %v135_v51 }
 0x102   :  { %v401_v52 = vpop.eup %400  ;;  %v168_v53 = vmul.f32 %v164_v50, %v136_v49 }
 0x103   :  { %v403_v54 = vpop.eup %402  ;;  %v165_v56 = vadd.f32 1.0, %v401_v52 }
 0x104   :  { %274 = vmatprep.mubr.f32.mxu1 %v168_v53  ;;  %v166_v58 = vadd.f32 1.0, %v403_v54 }
 0x105   :  { %275 = vmatmul.mubr.f32.vlgmr.msra.gmra.mrb[0].mxu1 %v167_v55  ;;  %v169_v61 = vmul.f32 %v165_v56, %v137_v59 }
 0x106   :  { %v170_v60 = vmul.f32 %v166_v58, %v138_v57 }
 0x108   :  { %279 = vmatprep.mubr.f32.mxu1 %v170_v60 }
 0x109   :  { %280 = vmatmul.mubr.f32.gmra.mrb[2].mxu1 %v169_v61 }
 0x1d8   :  { %v338_v62 = vpop.f32.mrb[0].mxu1 }
 0x1d9   :  { %v339_v0 = vpop.f32.mrb[1].mxu1 }
 0x1da   :  { %v340_v1 = vadd.f32 %v339_v0, %v338_v62 }
 0x1dc   :  { %v277_v2 = vadd.f32 %v340_v1, %v305_v63  ;;  %v341_v3 = vpop.f32.mrb[2].mxu1 }
 0x1dd   :  { %v342_v4 = vpop.f32.mrb[3].mxu1 }
 0x1de   :  { %285 = vst.msk [vmem:[#allocation2] sm:$0xff] %vm51_vm0, %v277_v2  ;;  %v343_v5 = vadd.f32 %v342_v4, %v341_v3 }
 0x1e0   :  { %v282_v6 = vadd.f32 %v343_v5, %v305_v63 }
 0x1e2   :  { %286 = vst.msk [vmem:[#allocation2 + $0x8] sm:$0xff] %vm51_vm0, %v282_v6 }
 0x1e3   :  { %415 = shalt.err (!%p412_p4)
}
 0x1e4   :  { %s416_s0 = scalar_lea.hbm %s639_s5, 256 }
 0x1e5   :  { %p417_p5 = scmp.ne.s32.totalorder %s639_s5, %s416_s0  ;;  %p420_p6 = scmp.lt.u32.totalorder %s416_s0, %s639_s5 }
 0x1e7   :  { %p422_p7 = pnand %p420_p6, %p417_p5 }
 0x1e9   :  { %425 = shalt.err (!%p422_p7)
}
 0x1ea   :  { %s430_s23 = smov 128   ;;  %s431_s24 = smov 8  }
 0x1eb   :  { %298 = dma.vmem_to_hbm [thread:$0]  %s293_s16, 256, %s639_s5, [#allocation3], %s430_s23, %s430_s23, %s431_s24  }
 0x1ec   :  { %426 = dma.done.wait [#allocation3], 256  }
 0x1ed   :  { %427 = vsyncadd [#allocation3], 4294967040 }
 0x1ee   :  { %302 = vsyncpa [#allocation3], 1 }

// kernel: tpu_custom_call.1
= control target key start
LH: loop header
LB: loop body
LE: loop exit
PB: predicated region body
PF: predicated region fallthrough
CT: control target
= control target key end

     0   :  { %v428_v7 = vmov 0.0   ;;  %s634_s0 = inlined_call_operand.vmem [shape: f32[16,64], index: 0, kind: input, shape index: {}]   ;;  %s635_s1 = inlined_call_operand.vmem [shape: f32[64,256], index: 1, kind: input, shape index: {}]   ;;  %s636_s2 = inlined_call_operand.vmem [shape: f32[1,256], index: 2, kind: input, shape index: {}]   ;;  %s637_s3 = inlined_call_operand.vmem [shape: f32[256,64], index: 3, kind: input, shape index: {}]   ;;  %s638_s4 = inlined_call_operand.vmem [shape: f32[1,64], index: 4, kind: input, shape index: {}]   ;;  %s639_s5 = inlined_call_operand.hbm [shape: f32[16,64], index: 5, kind: output, shape index: {}]  }
   0x1   :  { %v24_v0 = vld [vmem:[%s635_s1 + $0x8] sm:$0xff]  ;;  %v26_v1 = vld [vmem:[%s635_s1 + $0x18] sm:$0xff]  ;;  %v23_v2 = vld [vmem:[%s635_s1] sm:$0xff]  ;;  %122 = vmatprep.mubr.f32.mxu0 %v428_v7 }
   0x2   :  { %v344_v3 = vpack.c.bf16 %v26_v1, %v24_v0  ;;  %v25_v4 = vld [vmem:[%s635_s1 + $0x10] sm:$0xff]  ;;  %v28_v5 = vld [vmem:[%s635_s1 + $0x28] sm:$0xff]  ;;  %v30_v6 = vld [vmem:[%s635_s1 + $0x38] sm:$0xff] }
   0x3   :  { %v346_v8 = vpack.c.bf16 %v25_v4, %v23_v2  ;;  %v348_v9 = vpack.c.bf16 %v30_v6, %v28_v5  ;;  %v27_v10 = vld [vmem:[%s635_s1 + $0x20] sm:$0xff]  ;;  %v29_v11 = vld [vmem:[%s635_s1 + $0x30] sm:$0xff]  ;;  %v32_v12 = vld [vmem:[%s635_s1 + $0x48] sm:$0xff] }
   0x4   :  { %345 = vmatprep.subr.bf16.mxu0 %v344_v3  ;;  %v34_v13 = vld [vmem:[%s635_s1 + $0x58] sm:$0xff]  ;;  %v350_v14 = vpack.c.bf16 %v29_v11, %v27_v10  ;;  %v31_v15 = vld [vmem:[%s635_s1 + $0x40] sm:$0xff]  ;;  %v33_v17 = vld [vmem:[%s635_s1 + $0x50] sm:$0xff] }
   0x5   :  { %347 = vmatpush1.bf16.msra.mxu0 %v346_v8  ;;  %v352_v16 = vpack.c.bf16 %v34_v13, %v32_v12  ;;  %v36_v18 = vld [vmem:[%s635_s1 + $0x68] sm:$0xff]  ;;  %v38_v19 = vld [vmem:[%s635_s1 + $0x78] sm:$0xff]  ;;  %v187_v20 = vld [vmem:[%s637_s3 + $0x80] sm:$0xff] }
   0x6   :  { %349 = vmatprep.subr.bf16.mxu0 %v348_v9  ;;  %v188_v21 = vld [vmem:[%s637_s3 + $0x88] sm:$0xff]  ;;  %v171_v22 = vld [vmem:[%s637_s3] sm:$0xff] }
   0x7   :  { %v360_v23 = vpack.c.bf16 %v188_v21, %v187_v20  ;;  %v172_v24 = vld [vmem:[%s637_s3 + $0x8] sm:$0xff] }
   0x8   :  { %10 = vsyncpa [#allocation3], 0  ;;  %v354_v25 = vpack.c.bf16 %v33_v17, %v31_v15  ;;  %v362_v26 = vpack.c.bf16 %v172_v24, %v171_v22  ;;  %v356_v27 = vpack.c.bf16 %v38_v19, %v36_v18  ;;  %v35_v28 = vld [vmem:[%s635_s1 + $0x60] sm:$0xff]  ;;  %v37_v29 = vld [vmem:[%s635_s1 + $0x70] sm:$0xff]  ;;  %vm51_vm0 = vcmask 523264   ;;  %s429_s15 = smov [#allocation2]  }
   0x9   :  { %351 = vmatpush1.bf16.msra.mxu0 %v350_v14  ;;  %361 = vmatprep.subr.bf16.mxu1 %v360_v23  ;;  %v358_v30 = vpack.c.bf16 %v37_v29, %v35_v28  ;;  %v21_v31 = vld [vmem:[%s634_s0] sm:$0xff]  ;;  %v22_v32 = vld [vmem:[%s634_s0 + $0x8] sm:$0xff]  ;;  %v189_v33 = vld [vmem:[%s637_s3 + $0x90] sm:$0xff]  ;;  %v41_v11 = vlaneseq  ;;  %s292_s16 = sshll.u32 %s429_s15, 4  ;;  %s293_s16 = int_to_ptr.vmem [resolvable:$true] %s292_s16 }
   0xa   :  { %353 = vmatprep.subr.bf16.mxu0 %v352_v16  ;;  %363 = vmatpush3.bf16.msra.mxu1 %v362_v26  ;;  %v190_v34 = vld [vmem:[%s637_s3 + $0x98] sm:$0xff]  ;;  %v173_v36 = vld [vmem:[%s637_s3 + $0x10] sm:$0xff]  ;;  %v191_v39 = vld [vmem:[%s637_s3 + $0xa0] sm:$0xff]  ;;  %s404_s17 = scalar_lea.vmem %s293_s16, 256  ;;  %p409_p1 = scmp.lt.s32.totalorder %s293_s16, %s293_s16 }
   0xb   :  { %v364_v35 = vpack.c.bf16 %v190_v34, %v189_v33  ;;  %v174_v37 = vld [vmem:[%s637_s3 + $0x18] sm:$0xff]  ;;  %v192_v40 = vld [vmem:[%s637_s3 + $0xa8] sm:$0xff]  ;;  %v175_v42 = vld [vmem:[%s637_s3 + $0x20] sm:$0xff]  ;;  %v42_v12 = vshrl.u32 %v41_v11, 7  ;;  %p405_p0 = scmp.ne.s32.totalorder %s293_s16, %s404_s17  ;;  %p410_p2 = scmp.lt.s32.totalorder %s404_s17, %s404_s17 }
   0xc   :  { %v366_v38 = vpack.c.bf16 %v174_v37, %v173_v36  ;;  %v368_v41 = vpack.c.bf16 %v192_v40, %v191_v39  ;;  %v176_v43 = vld [vmem:[%s637_s3 + $0x28] sm:$0xff]  ;;  %v193_v45 = vld [vmem:[%s637_s3 + $0xb0] sm:$0xff]  ;;  %v194_v46 = vld [vmem:[%s637_s3 + $0xb8] sm:$0xff] }
   0xd   :  { %355 = vmatpush1.bf16.msra.mxu0 %v354_v25  ;;  %365 = vmatprep.subr.bf16.mxu1 %v364_v35  ;;  %v370_v44 = vpack.c.bf16 %v176_v43, %v175_v42  ;;  %v372_v47 = vpack.c.bf16 %v194_v46, %v193_v45  ;;  %v177_v48 = vld [vmem:[%s637_s3 + $0x30] sm:$0xff]  ;;  %v178_v49 = vld [vmem:[%s637_s3 + $0x38] sm:$0xff]  ;;  %v195_v51 = vld [vmem:[%s637_s3 + $0xc0] sm:$0xff]  ;;  %v43_v13 = vsub.s32 0, %v42_v12  ;;  %v47_v15 = vsub.s32 1, %v42_v12  ;;  %p411_p3 = por %p410_p2, %p409_p1 }
   0xe   :  { %357 = vmatprep.subr.bf16.mxu0 %v356_v27  ;;  %367 = vmatpush3.bf16.msra.mxu1 %v366_v38  ;;  %v374_v50 = vpack.c.bf16 %v178_v49, %v177_v48  ;;  %v196_v52 = vld [vmem:[%s637_s3 + $0xc8] sm:$0xff]  ;;  %v179_v54 = vld [vmem:[%s637_s3 + $0x40] sm:$0xff]  ;;  %v197_v57 = vld [vmem:[%s637_s3 + $0xd0] sm:$0xff] }
   0xf   :  { %369 = vmatprep.subr.bf16.mxu1 %v368_v41  ;;  %v376_v53 = vpack.c.bf16 %v196_v52, %v195_v51  ;;  %v180_v55 = vld [vmem:[%s637_s3 + $0x48] sm:$0xff]  ;;  %v198_v58 = vld [vmem:[%s637_s3 + $0xd8] sm:$0xff]  ;;  %v181_v60 = vld [vmem:[%s637_s3 + $0x50] sm:$0xff]  ;;  %p412_p4 = pnand %p411_p3, %p405_p0 }
  0x10   :  { %v378_v56 = vpack.c.bf16 %v180_v55, %v179_v54  ;;  %v380_v59 = vpack.c.bf16 %v198_v58, %v197_v57  ;;  %v182_v61 = vld [vmem:[%s637_s3 + $0x58] sm:$0xff]  ;;  %v199_v63 = vld [vmem:[%s637_s3 + $0xe0] sm:$0xff]  ;;  %v200_v0 = vld [vmem:[%s637_s3 + $0xe8] sm:$0xff] }
  0x11   :  { %359 = vmatpush1.bf16.msra.mxu0 %v358_v30  ;;  %v382_v62 = vpack.c.bf16 %v182_v61, %v181_v60  ;;  %v183_v1 = vld [vmem:[%s637_s3 + $0x60] sm:$0xff]  ;;  %v384_v2 = vpack.c.bf16 %v200_v0, %v199_v63  ;;  %v184_v3 = vld [vmem:[%s637_s3 + $0x68] sm:$0xff]  ;;  %v201_v4 = vld [vmem:[%s637_s3 + $0xf0] sm:$0xff] }
  0x12   :  { %371 = vmatpush3.bf16.msra.mxu1 %v370_v44  ;;  %v202_v5 = vld [vmem:[%s637_s3 + $0xf8] sm:$0xff]  ;;  %v386_v6 = vpack.c.bf16 %v184_v3, %v183_v1  ;;  %v185_v8 = vld [vmem:[%s637_s3 + $0x70] sm:$0xff]  ;;  %v39_v14 = vld [vmem:[%s636_s2] sm:$0x3] }
  0x13   :  { %373 = vmatprep.subr.bf16.mxu1 %v372_v47  ;;  %v186_v9 = vld [vmem:[%s637_s3 + $0x78] sm:$0xff]  ;;  %v44_v16 = vrot.slane %v39_v14, %v43_v13  ;;  %v48_v17 = vrot.slane %v39_v14, %v47_v15  ;;  %v305_v63 = vld [vmem:[%s638_s4] ss:$0 sm:$0xff] }
  0x14   :  { %303 = vmatmul.mubr.msk.f32.vlgmr.msra.gmra.mrb[0].mxu0 %vm51_vm0, %v21_v31  ;;  %v390_v10 = vpack.c.bf16 %v186_v9, %v185_v8 }
  0x15   :  { %128 = vmatprep.mubr.f32.mxu0 %v428_v7  ;;  %v388_v7 = vpack.c.bf16 %v202_v5, %v201_v4 }
  0x16   :  { %375 = vmatpush3.bf16.msra.mxu1 %v374_v50 }
  0x17   :  { %377 = vmatprep.subr.bf16.mxu1 %v376_v53 }
  0x18   :  { %304 = vmatmul.mubr.msk.f32.gmra.mrb[2].mxu0 %vm51_vm0, %v22_v32 }
  0x1a   :  { %379 = vmatpush3.bf16.msra.mxu1 %v378_v56 }
  0x1b   :  { %381 = vmatprep.subr.bf16.mxu1 %v380_v59 }
  0x1e   :  { %383 = vmatpush3.bf16.msra.mxu1 %v382_v62 }
  0x1f   :  { %385 = vmatprep.subr.bf16.mxu1 %v384_v2 }
  0x22   :  { %387 = vmatpush3.bf16.msra.mxu1 %v386_v6 }
  0x23   :  { %389 = vmatprep.subr.bf16.mxu1 %v388_v7 }
  0x26   :  { %391 = vmatpush3.bf16.msra.mxu1 %v390_v10 }
  0xe7   :  { %v124_v18 = vpop.f32.mrb[0].mxu0 }
  0xe8   :  { %v125_v19 = vadd.f32 %v124_v18, %v44_v16  ;;  %v126_v20 = vpop.f32.mrb[1].mxu0 }
  0xe9   :  { %v127_v21 = vadd.f32 %v126_v20, %v48_v17 }
  0xea   :  { %v139_v22 = vmul.f32 %v125_v19, %v125_v19  ;;  %v135_v51 = vmul.f32 0.5, %v125_v19 }
  0xeb   :  { %v140_v23 = vmul.f32 %v127_v21, %v127_v21  ;;  %v130_v24 = vpop.f32.mrb[2].mxu0  ;;  %v136_v49 = vmul.f32 0.5, %v127_v21 }
  0xec   :  { %v143_v25 = vmul.f32 0.044715, %v139_v22  ;;  %v131_v26 = vadd.f32 %v130_v24, %v44_v16  ;;  %v132_v27 = vpop.f32.mrb[3].mxu0 }
  0xed   :  { %v144_v28 = vmul.f32 0.044715, %v140_v23  ;;  %v133_v29 = vadd.f32 %v132_v27, %v48_v17 }
  0xee   :  { %v147_v30 = vadd.f32 1.0, %v143_v25  ;;  %v141_v31 = vmul.f32 %v131_v26, %v131_v26  ;;  %v137_v59 = vmul.f32 0.5, %v131_v26 }
  0xef   :  { %v148_v32 = vadd.f32 1.0, %v144_v28  ;;  %v142_v33 = vmul.f32 %v133_v29, %v133_v29  ;;  %v138_v57 = vmul.f32 0.5, %v133_v29 }
  0xf0   :  { %v151_v34 = vmul.f32 %v147_v30, %v125_v19  ;;  %v145_v35 = vmul.f32 0.044715, %v141_v31 }
  0xf1   :  { %v152_v36 = vmul.f32 %v148_v32, %v127_v21  ;;  %v146_v37 = vmul.f32 0.044715, %v142_v33 }
  0xf2   :  { %v155_v38 = vmul.f32 0.7978846, %v151_v34  ;;  %v149_v39 = vadd.f32 1.0, %v145_v35 }
  0xf3   :  { %v150_v40 = vadd.f32 1.0, %v146_v37  ;;  %v156_v41 = vmul.f32 0.7978846, %v152_v36 }
  0xf4   :  { %396 = vtanh.f32 %v155_v38  ;;  %v153_v42 = vmul.f32 %v149_v39, %v131_v26 }
  0xf5   :  { %v154_v43 = vmul.f32 %v150_v40, %v133_v29  ;;  %398 = vtanh.f32 %v156_v41 }
  0xf6   :  { %v157_v44 = vmul.f32 0.7978846, %v153_v42 }
  0xf7   :  { %v158_v45 = vmul.f32 0.7978846, %v154_v43 }
  0xf8   :  { %400 = vtanh.f32 %v157_v44 }
  0xf9   :  { %402 = vtanh.f32 %v158_v45 }
  0xfe   :  { %v397_v46 = vpop.eup %396 }
  0xff   :  { %v399_v47 = vpop.eup %398  ;;  %v163_v48 = vadd.f32 1.0, %v397_v46 }
 0x100   :  { %v164_v50 = vadd.f32 1.0, %v399_v47 }
 0x101   :  { %v167_v55 = vmul.f32 %v163_v48, %v135_v51 }
 0x102   :  { %v401_v52 = vpop.eup %400  ;;  %v168_v53 = vmul.f32 %v164_v50, %v136_v49 }
 0x103   :  { %v403_v54 = vpop.eup %402  ;;  %v165_v56 = vadd.f32 1.0, %v401_v52 }
 0x104   :  { %274 = vmatprep.mubr.f32.mxu1 %v168_v53  ;;  %v166_v58 = vadd.f32 1.0, %v403_v54 }
 0x105   :  { %275 = vmatmul.mubr.f32.vlgmr.msra.gmra.mrb[0].mxu1 %v167_v55  ;;  %v169_v61 = vmul.f32 %v165_v56, %v137_v59 }
 0x106   :  { %v170_v60 = vmul.f32 %v166_v58, %v138_v57 }
 0x108   :  { %279 = vmatprep.mubr.f32.mxu1 %v170_v60 }
 0x109   :  { %280 = vmatmul.mubr.f32.gmra.mrb[2].mxu1 %v169_v61 }
 0x1d8   :  { %v338_v62 = vpop.f32.mrb[0].mxu1 }
 0x1d9   :  { %v339_v0 = vpop.f32.mrb[1].mxu1 }
 0x1da   :  { %v340_v1 = vadd.f32 %v339_v0, %v338_v62 }
 0x1dc   :  { %v277_v2 = vadd.f32 %v340_v1, %v305_v63  ;;  %v341_v3 = vpop.f32.mrb[2].mxu1 }
 0x1dd   :  { %v342_v4 = vpop.f32.mrb[3].mxu1 }
 0x1de   :  { %285 = vst.msk [vmem:[#allocation2] sm:$0xff] %vm51_vm0, %v277_v2  ;;  %v343_v5 = vadd.f32 %v342_v4, %v341_v3 }
 0x1e0   :  { %v282_v6 = vadd.f32 %v343_v5, %v305_v63 }
 0x1e2   :  { %286 = vst.msk [vmem:[#allocation2 + $0x8] sm:$0xff] %vm51_vm0, %v282_v6 }
 0x1e3   :  { %415 = shalt.err (!%p412_p4)
}
 0x1e4   :  { %s416_s0 = scalar_lea.hbm %s639_s5, 256 }
 0x1e5   :  { %p417_p5 = scmp.ne.s32.totalorder %s639_s5, %s416_s0  ;;  %p420_p6 = scmp.lt.u32.totalorder %s416_s0, %s639_s5 }
 0x1e7   :  { %p422_p7 = pnand %p420_p6, %p417_p5 }
 0x1e9   :  { %425 = shalt.err (!%p422_p7)
}
 0x1ea   :  { %s430_s23 = smov 128   ;;  %s431_s24 = smov 8  }
 0x1eb   :  { %298 = dma.vmem_to_hbm [thread:$0]  %s293_s16, 256, %s639_s5, [#allocation3], %s430_s23, %s430_s23, %s431_s24  }
 0x1ec   :  { %426 = dma.done.wait [#allocation3], 256  }
 0x1ed   :  { %427 = vsyncadd [#allocation3], 4294967040 }
 0x1ee   :  { %302 = vsyncpa [#allocation3], 1 }

</bundles_post_ra>
